<compile_context>
chip_gen: v7x
topology: tpu7x:2x2x1
jax: 0.10.0
libtpu: 0.0.40
codegen_flags: <defaults>
</compile_context>

<pallas_src>
import functools

import jax
import jax.numpy as jnp
from jax.experimental import pallas as pl
from jax.experimental.pallas import tpu as pltpu

LN_EPS = 1e-5    # nn.LayerNorm default
GRN_EPS = 1e-6   # GRN default
KSIZE = 7        # depthwise kernel size
PAD = 3          # conv padding
HALO = 8         # 8-row (sublane-aligned) right-halo block; only 6 rows used


def _round_up(n, m):
    return ((n + m - 1) // m) * m


def _vmem_capacity_bytes():
    """Best-effort VMEM capacity query; conservative (v7x-sized) fallback."""
    try:
        info = pltpu.get_tpu_info()
        cap = int(getattr(info, "vmem_capacity_bytes", 0))
        if cap > 0:
            return cap
    except Exception:
        pass
    return 64 * 1024 * 1024


def _convnext_kernel(xm_ref, xh_ref, dww_ref, dwb_ref, lng_ref, lnb_ref,
                     w1_ref, b1_ref, gg_ref, gb_ref, w2_ref, b2_ref,
                     o_ref, sumsq_ref, xwin_ref, *hcache,
                     TL, C, H, L, LP, cache_h, approx_gelu):
    # xm_ref : (TL, Cp)   main input tile (rows lt*TL .. lt*TL+TL of x_pad)
    # xh_ref : (8, Cp)    right-halo block (rows (lt+1)*TL .. +8 of x_pad)
    # dww_ref: (7, Cp)    depthwise weights (tap, channel)
    # dwb_ref/lng_ref/lnb_ref/b2_ref: (1, Cp)
    # w1_ref : (Cp, Hp),  b1_ref/gg_ref/gb_ref: (1, Hp),  w2_ref: (Hp, Cp)
    # o_ref  : (TL, Cp)   output tile (x.dtype)
    # sumsq_ref: (1, Hp)  f32 scratch carrying sum_L(h^2) across L-tiles
    # xwin_ref : (TL+8, Cp) f32 scratch: stitched haloed window
    # hcache   : optional (nl, TL, Hp) scratch caching h between the phases
    phase = pl.program_id(1)
    lt = pl.program_id(2)
    hcache_ref = hcache[0] if cache_h else None

    # Stitch the haloed window from the two lane-dense, non-overlapping blocks.
    xwin_ref[0:TL, :] = xm_ref[...].astype(jnp.float32)
    xwin_ref[TL:TL + HALO, :] = xh_ref[...].astype(jnp.float32)

    def front_half():
        # Depthwise conv1d, kernel 7: 7 shifted FMAs on the VPU, bias-init.
        # (Further opt: pltpu.roll on the idle XLU for the misaligned taps.)
        acc = xwin_ref[0:TL, :] * dww_ref[0:1, :] + dwb_ref[...]
        for k in range(1, KSIZE):                     # static unroll
            acc = acc + xwin_ref[k:k + TL, :] * dww_ref[k:k + 1, :]
        # LayerNorm over the real C channels.  Padded lanes of acc are exactly
        # 0 (weights/bias padded with 0), so with var = E[x^2]-mean^2 no lane
        # mask is needed and padded lanes of xn stay 0 (ln gamma/beta pad = 0).
        mean = jnp.sum(acc, axis=-1, keepdims=True) * (1.0 / C)
        var = jnp.sum(acc * acc, axis=-1, keepdims=True) * (1.0 / C) - mean * mean
        xn = (acc - mean) * jax.lax.rsqrt(var + LN_EPS) * lng_ref[...] + lnb_ref[...]
        # pwconv_1 (1x1 conv == matmul on the MXU, f32 accumulation)
        h = jnp.dot(xn.astype(w1_ref.dtype), w1_ref[...],
                    preferred_element_type=jnp.float32) + b1_ref[...]   # (TL, Hp)
        if approx_gelu:
            h = jax.nn.gelu(h, approximate=True)      # EUP tanh, opt-in only
        else:                                         # exact erf = nn.GELU()
            h = 0.5 * h * (1.0 + jax.lax.erf(h * 0.7071067811865476))
        return h

    @pl.when(jnp.logical_and(phase == 0, lt == 0))
    def _init():
        sumsq_ref[...] = jnp.zeros_like(sumsq_ref)

    # --- GRN pass 0: accumulate sum over L of h^2 per 4C channel ---
    @pl.when(phase == 0)
    def _accumulate():
        h = front_half()
        hsq = h * h
        if LP > L:  # static: mask the L-padding rows out of the GRN statistics
            row = lt * TL + jax.lax.broadcasted_iota(jnp.int32, (TL, 1), 0)
            hsq = jnp.where(row < L, hsq, 0.0)
        sumsq_ref[...] += jnp.sum(hsq, axis=0, keepdims=True)
        if cache_h:
            hcache_ref[lt] = h.astype(hcache_ref.dtype)

    # --- GRN pass 1: apply + pwconv_2 + residual ---
    @pl.when(phase == 1)
    def _apply():
        if cache_h:
            h = hcache_ref[lt].astype(jnp.float32)    # no recompute
        else:
            h = front_half()                          # VMEM could not hold h
        gx = jnp.sqrt(sumsq_ref[...])                               # (1, Hp)
        gmean = jnp.sum(gx, axis=-1, keepdims=True) * (1.0 / H)     # real H
        nx = gx / jnp.maximum(gmean, GRN_EPS)                       # clamp(min=eps)
        hh = h * (1.0 + gg_ref[...] * nx) + gb_ref[...]             # fused GRN apply
        y = jnp.dot(hh.astype(w2_ref.dtype), w2_ref[...],
                    preferred_element_type=jnp.float32) + b2_ref[...]  # (TL, Cp)
        # residual comes straight out of the stitched window (no extra stream)
        o_ref[...] = (xwin_ref[PAD:PAD + TL, :] + y).astype(o_ref.dtype)


@functools.partial(jax.jit,
                   static_argnames=("block_l", "use_bf16", "approx_gelu", "cache_h"))
def convnext_block(x, dw_w, dw_b, ln_g, ln_b, w1, b1, grn_g, grn_b, w2, b2,
                   *, block_l=512, use_bf16=True, approx_gelu=False, cache_h=None):
    """ConvNeXtBlock forward.  x: (B, C, L) PyTorch NCL layout -> (B, C, L).

    dw_w: (7, C) = dwconv.weight[:, 0, :].T      dw_b: (C,)
    ln_g/ln_b: (C,)
    w1: (C, 4C) = pwconv_1.weight.squeeze(-1).T  b1: (4C,)
    grn_g/grn_b: (4C,)
    w2: (4C, C) = pwconv_2.weight.squeeze(-1).T  b2: (C,)
    """
    B, C, L = x.shape
    H = 4 * C
    f32 = jnp.float32
    mm_dtype = jnp.bfloat16 if use_bf16 else f32

    # lane-dense channel padding (multiples of 128)
    Cp = _round_up(C, 128)
    Hp = _round_up(H, 128)

    # 8-aligned L tile; L is padded up to a tile multiple (padded rows are
    # masked out of the GRN statistics and sliced off the output).
    tl = _round_up(min(block_l, _round_up(L, 8)), 8)
    Lp = _round_up(L, tl)
    nl = Lp // tl

    # --- per-generation VMEM budget & h-cache decision -----------------------
    cap = _vmem_capacity_bytes()
    vmem_limit = max(32 * 2 ** 20, min((cap * 3) // 4, 100 * 2 ** 20))

    mm_item = 2 if use_bf16 else 4
    x_item = jnp.dtype(x.dtype).itemsize
    cache_bytes = Lp * Hp * mm_item                       # (nl, tl, Hp) scratch
    fixed_bytes = (2 * 2 * Cp * Hp * mm_item              # w1+w2, double-buffered
                   + 4 * tl * Cp * max(x_item, 4)         # in/out double buffers
                   + (tl + HALO) * Cp * 4                 # stitched window scratch
                   + 64 * (Cp + Hp))                      # small parameter vectors
    if cache_h is None:
        cache_h = (cache_bytes + fixed_bytes) <= int(0.8 * vmem_limit)

    # --- channel-padded parameters (zero padding keeps padded lanes inert) ---
    dw_w_p = jnp.pad(dw_w.astype(f32), ((0, 0), (0, Cp - C)))
    dw_b_p = jnp.pad(dw_b.astype(f32), (0, Cp - C)).reshape(1, Cp)
    ln_g_p = jnp.pad(ln_g.astype(f32), (0, Cp - C)).reshape(1, Cp)
    ln_b_p = jnp.pad(ln_b.astype(f32), (0, Cp - C)).reshape(1, Cp)
    w1_p = jnp.pad(w1.astype(f32), ((0, Cp - C), (0, Hp - H))).astype(mm_dtype)
    b1_p = jnp.pad(b1.astype(f32), (0, Hp - H)).reshape(1, Hp)
    gg_p = jnp.pad(grn_g.astype(f32), (0, Hp - H)).reshape(1, Hp)
    gb_p = jnp.pad(grn_b.astype(f32), (0, Hp - H)).reshape(1, Hp)
    w2_p = jnp.pad(w2.astype(f32), ((0, Hp - H), (0, Cp - C))).astype(mm_dtype)
    b2_p = jnp.pad(b2.astype(f32), (0, Cp - C)).reshape(1, Cp)

    # --- activations: NLC, channel-padded, 3 left-pad rows + (Lp-L)+5 right-pad
    # rows -> (B, Lp+8, Cp); kept in x's native dtype, never duplicated. -------
    x_lc = jnp.transpose(x, (0, 2, 1))                               # (B, L, C)
    x_pad = jnp.pad(x_lc, ((0, 0), (PAD, Lp - L + HALO - PAD), (0, Cp - C)))

    kernel = functools.partial(_convnext_kernel, TL=tl, C=C, H=H, L=L, LP=Lp,
                               cache_h=cache_h, approx_gelu=approx_gelu)

    const = lambda b, ph, lt: (0, 0)      # parameters: same block every step
    hstride = tl // 8                     # halo block index stride (8-row blocks)

    scratch = [pltpu.VMEM((1, Hp), f32),            # GRN sum(h^2) carry
               pltpu.VMEM((tl + HALO, Cp), f32)]    # stitched haloed window
    if cache_h:
        scratch.append(pltpu.VMEM((nl, tl, Hp), mm_dtype))

    out = pl.pallas_call(
        kernel,
        out_shape=jax.ShapeDtypeStruct((B, Lp, Cp), x.dtype),
        grid_spec=pltpu.PrefetchScalarGridSpec(
            num_scalar_prefetch=0,
            # (batch, GRN phase, L tile); phase 0 accumulates, phase 1 applies.
            grid=(B, 2, nl),
            in_specs=[
                # main tile and 8-row right halo are two views of ONE array.
                pl.BlockSpec((None, tl, Cp), lambda b, ph, lt: (b, lt, 0)),
                pl.BlockSpec((None, HALO, Cp),
                             lambda b, ph, lt: (b, (lt + 1) * hstride, 0)),
                pl.BlockSpec((KSIZE, Cp), const),
                pl.BlockSpec((1, Cp), const),
                pl.BlockSpec((1, Cp), const),
                pl.BlockSpec((1, Cp), const),
                pl.BlockSpec((Cp, Hp), const),
                pl.BlockSpec((1, Hp), const),
                pl.BlockSpec((1, Hp), const),
                pl.BlockSpec((1, Hp), const),
                pl.BlockSpec((Hp, Cp), const),
                pl.BlockSpec((1, Cp), const),
            ],
            # During phase 0 the output stays parked on tile 0 (never written,
            # never flushed until phase 1 rewrites it); phase 1 walks the tiles.
            out_specs=pl.BlockSpec((None, tl, Cp),
                                   lambda b, ph, lt: (b, lt * ph, 0)),
            scratch_shapes=scratch,
        ),
        compiler_params=pltpu.CompilerParams(
            dimension_semantics=("parallel", "arbitrary", "arbitrary"),
            vmem_limit_bytes=vmem_limit),
    )(x_pad, x_pad, dw_w_p, dw_b_p, ln_g_p, ln_b_p, w1_p, b1_p, gg_p, gb_p,
      w2_p, b2_p)

    out = out[:, :L, :C]
    return jnp.transpose(out, (0, 2, 1))                             # (B, C, L)


def _reference(x, dw_w, dw_b, ln_g, ln_b, w1, b1, grn_g, grn_b, w2, b2):
    """Pure-JAX f32 reference of the PyTorch forward, for correctness checks."""
    B, C, L = x.shape
    x_lc = jnp.transpose(x, (0, 2, 1))                               # (B, L, C)
    xp = jnp.pad(x_lc, ((0, 0), (PAD, PAD), (0, 0)))
    dw = sum(xp[:, k:k + L, :] * dw_w[k][None, None, :] for k in range(KSIZE))
    dw = dw + dw_b[None]
    mean = jnp.mean(dw, axis=-1, keepdims=True)
    var = jnp.mean((dw - mean) ** 2, axis=-1, keepdims=True)
    xn = (dw - mean) / jnp.sqrt(var + LN_EPS) * ln_g[None] + ln_b[None]
    h = jnp.einsum('blc,ch->blh', xn, w1) + b1[None]
    h = 0.5 * h * (1.0 + jax.lax.erf(h / jnp.sqrt(2.0)))
    gx = jnp.sqrt(jnp.sum(h * h, axis=1, keepdims=True))             # (B, 1, 4C)
    nx = gx / jnp.maximum(jnp.mean(gx, axis=-1, keepdims=True), GRN_EPS)
    h = grn_g[None] * (h * nx) + grn_b[None] + h
    y = jnp.einsum('blh,hc->blc', h, w2) + b2[None]
    return x + jnp.transpose(y, (0, 2, 1))


if __name__ == "__main__":
    key = jax.random.PRNGKey(0)
    ks = jax.random.split(key, 16)

    B, C, L = 2, 8, 16
    H = 4 * C
    x = jax.random.normal(ks[0], (B, C, L), jnp.float32)

    # Parameters (shapes match the PyTorch module; values synthetic).
    params = dict(
        dw_w=jax.random.normal(ks[1], (KSIZE, C), jnp.float32) * 0.2,
        dw_b=0.1 * jax.random.normal(ks[2], (C,), jnp.float32),
        ln_g=1.0 + 0.1 * jax.random.normal(ks[3], (C,), jnp.float32),
        ln_b=0.1 * jax.random.normal(ks[4], (C,), jnp.float32),
        w1=jax.random.normal(ks[5], (C, H), jnp.float32) * 0.2,
        b1=0.1 * jax.random.normal(ks[6], (H,), jnp.float32),
        grn_g=0.1 * jax.random.normal(ks[7], (H,), jnp.float32),
        grn_b=0.1 * jax.random.normal(ks[8], (H,), jnp.float32),
        w2=jax.random.normal(ks[9], (H, C), jnp.float32) * 0.2,
        b2=0.1 * jax.random.normal(ks[10], (C,), jnp.float32),
    )

    ref = _reference(x, **params)

    # 1) bf16 MXU path; block_l=8 -> 2 L-tiles, exercises the two-phase GRN
    #    with the auto-enabled VMEM h-cache and the parked-output schedule.
    out = convnext_block(x, **params, block_l=8, use_bf16=True)
    out = jax.block_until_ready(out)
    assert out.shape == (B, C, L) and out.dtype == x.dtype
    err_bf16 = float(jnp.max(jnp.abs(out - ref)))
    assert err_bf16 < 5e-2, err_bf16       # relaxed tolerance for bf16 matmuls

    # 2) f32 path with the recompute fallback (cache_h=False): tight tolerance.
    out_f32 = convnext_block(x, **params, block_l=8, use_bf16=False,
                             cache_h=False)
    out_f32 = jax.block_until_ready(out_f32)
    err_f32 = float(jnp.max(jnp.abs(out_f32 - ref)))
    assert err_f32 < 1e-3, err_f32

    # 3) L not a multiple of the tile: exercises L-padding + GRN row masking.
    L2 = 13
    x2 = jax.random.normal(ks[11], (B, C, L2), jnp.float32)
    ref2 = _reference(x2, **params)
    out2 = convnext_block(x2, **params, block_l=8, use_bf16=False)
    out2 = jax.block_until_ready(out2)
    err_mask = float(jnp.max(jnp.abs(out2 - ref2)))
    assert err_mask < 1e-3, err_mask

    print("KERNEL_OK")
</pallas_src>

<mosaic_0001>
module attributes {stable_mosaic.version = 11 : i64} {
  func.func @_convnext_kernel(%arg0: i32, %arg1: i32, %arg2: i32, %arg3: memref<1x8x128xf32, #tpu.memory_space<vmem>>, %arg4: memref<1x8x128xf32, #tpu.memory_space<vmem>>, %arg5: memref<7x128xf32, #tpu.memory_space<vmem>>, %arg6: memref<1x128xf32, #tpu.memory_space<vmem>>, %arg7: memref<1x128xf32, #tpu.memory_space<vmem>>, %arg8: memref<1x128xf32, #tpu.memory_space<vmem>>, %arg9: memref<128x128xbf16, #tpu.memory_space<vmem>>, %arg10: memref<1x128xf32, #tpu.memory_space<vmem>>, %arg11: memref<1x128xf32, #tpu.memory_space<vmem>>, %arg12: memref<1x128xf32, #tpu.memory_space<vmem>>, %arg13: memref<128x128xbf16, #tpu.memory_space<vmem>>, %arg14: memref<1x128xf32, #tpu.memory_space<vmem>>, %arg15: memref<1x8x128xf32, #tpu.memory_space<vmem>>, %arg16: memref<1x128xf32, #tpu.memory_space<vmem>>, %arg17: memref<16x128xf32, #tpu.memory_space<vmem>>, %arg18: memref<2x8x128xbf16, #tpu.memory_space<vmem>>) attributes {dimension_semantics = [#tpu.dimension_semantics<parallel>, #tpu.dimension_semantics<arbitrary>, #tpu.dimension_semantics<arbitrary>], iteration_bounds = array<i64: 2, 2, 2>, scalar_prefetch = 0 : i64, scratch_operands = 3 : i64, tpu.core_type = #tpu.core_type<tc>, window_params = [{transform_indices = @transform_0, window_bounds = array<i64: 1, 8, 128>}, {transform_indices = @transform_1, window_bounds = array<i64: 1, 8, 128>}, {pipeline_mode = #tpu.pipeline_mode<synchronous>, transform_indices = @transform_2, window_bounds = array<i64: 7, 128>}, {pipeline_mode = #tpu.pipeline_mode<synchronous>, transform_indices = @transform_3, window_bounds = array<i64: 1, 128>}, {pipeline_mode = #tpu.pipeline_mode<synchronous>, transform_indices = @transform_4, window_bounds = array<i64: 1, 128>}, {pipeline_mode = #tpu.pipeline_mode<synchronous>, transform_indices = @transform_5, window_bounds = array<i64: 1, 128>}, {pipeline_mode = #tpu.pipeline_mode<synchronous>, transform_indices = @transform_6, window_bounds = array<i64: 128, 128>}, {pipeline_mode = #tpu.pipeline_mode<synchronous>, transform_indices = @transform_7, window_bounds = array<i64: 1, 128>}, {pipeline_mode = #tpu.pipeline_mode<synchronous>, transform_indices = @transform_8, window_bounds = array<i64: 1, 128>}, {pipeline_mode = #tpu.pipeline_mode<synchronous>, transform_indices = @transform_9, window_bounds = array<i64: 1, 128>}, {pipeline_mode = #tpu.pipeline_mode<synchronous>, transform_indices = @transform_10, window_bounds = array<i64: 128, 128>}, {pipeline_mode = #tpu.pipeline_mode<synchronous>, transform_indices = @transform_11, window_bounds = array<i64: 1, 128>}, {transform_indices = @transform_12, window_bounds = array<i64: 1, 8, 128>}]} {
    %c0 = arith.constant 0 : index
    %c0_0 = arith.constant 0 : index
    %c0_1 = arith.constant 0 : index
    %0 = vector.load %arg3[%c0, %c0_0, %c0_1] : memref<1x8x128xf32, #tpu.memory_space<vmem>>, vector<1x8x128xf32>
    %1 = vector.shape_cast %0 : vector<1x8x128xf32> to vector<8x128xf32>
    %c0_2 = arith.constant 0 : index
    %c0_3 = arith.constant 0 : index
    %2 = vector.load %arg17[%c0_2, %c0_3] : memref<16x128xf32, #tpu.memory_space<vmem>>, vector<8x128xf32>
    tpu.vector_store %arg17[%c0_2, %c0_3], %1 {strides = array<i32>} : memref<16x128xf32, #tpu.memory_space<vmem>>, vector<8x128xf32>,
    %c0_4 = arith.constant 0 : index
    %c0_5 = arith.constant 0 : index
    %c0_6 = arith.constant 0 : index
    %3 = vector.load %arg4[%c0_4, %c0_5, %c0_6] : memref<1x8x128xf32, #tpu.memory_space<vmem>>, vector<1x8x128xf32>
    %4 = vector.shape_cast %3 : vector<1x8x128xf32> to vector<8x128xf32>
    %c8 = arith.constant 8 : index
    %c0_7 = arith.constant 0 : index
    %5 = vector.load %arg17[%c8, %c0_7] : memref<16x128xf32, #tpu.memory_space<vmem>>, vector<8x128xf32>
    tpu.vector_store %arg17[%c8, %c0_7], %4 {strides = array<i32>} : memref<16x128xf32, #tpu.memory_space<vmem>>, vector<8x128xf32>,
    %c0_i32 = arith.constant 0 : i32
    %6 = arith.cmpi eq, %arg1, %c0_i32 : i32
    %c0_i32_8 = arith.constant 0 : i32
    %7 = arith.cmpi eq, %arg2, %c0_i32_8 : i32
    %8 = arith.andi %6, %7 : i1
    %9 = arith.extui %8 : i1 to i32
    %c0_i32_9 = arith.constant 0 : i32
    %10 = arith.cmpi ne, %9, %c0_i32_9 : i32
    scf.if %10 {
      %cst = arith.constant 0.000000e+00 : f32
      %17 = vector.broadcast %cst : f32 to vector<1x128xf32>
      %c0_13 = arith.constant 0 : index
      %c0_14 = arith.constant 0 : index
      %18 = vector.load %arg16[%c0_13, %c0_14] : memref<1x128xf32, #tpu.memory_space<vmem>>, vector<1x128xf32>
      tpu.vector_store %arg16[%c0_13, %c0_14], %17 {strides = array<i32>} : memref<1x128xf32, #tpu.memory_space<vmem>>, vector<1x128xf32>,
    } else {
    }
    %c0_i32_10 = arith.constant 0 : i32
    %11 = arith.cmpi eq, %arg1, %c0_i32_10 : i32
    %12 = arith.extui %11 : i1 to i32
    %c0_i32_11 = arith.constant 0 : i32
    %13 = arith.cmpi ne, %12, %c0_i32_11 : i32
    scf.if %13 {
      %c0_13 = arith.constant 0 : index
      %c0_14 = arith.constant 0 : index
      %17 = vector.load %arg17[%c0_13, %c0_14] : memref<16x128xf32, #tpu.memory_space<vmem>>, vector<8x128xf32>
      %c0_15 = arith.constant 0 : index
      %c0_16 = arith.constant 0 : index
      %18 = vector.load %arg5[%c0_15, %c0_16] : memref<7x128xf32, #tpu.memory_space<vmem>>, vector<1x128xf32>
      %19 = vector.broadcast %18 : vector<1x128xf32> to vector<8x128xf32>
      %20 = arith.mulf %17, %19 : vector<8x128xf32>
      %c0_17 = arith.constant 0 : index
      %c0_18 = arith.constant 0 : index
      %21 = vector.load %arg6[%c0_17, %c0_18] : memref<1x128xf32, #tpu.memory_space<vmem>>, vector<1x128xf32>
      %22 = vector.broadcast %21 : vector<1x128xf32> to vector<8x128xf32>
      %23 = arith.addf %20, %22 : vector<8x128xf32>
      %c1 = arith.constant 1 : index
      %c0_19 = arith.constant 0 : index
      %24 = vector.load %arg17[%c1, %c0_19] : memref<16x128xf32, #tpu.memory_space<vmem>>, vector<8x128xf32>
      %c1_20 = arith.constant 1 : index
      %c0_21 = arith.constant 0 : index
      %25 = vector.load %arg5[%c1_20, %c0_21] : memref<7x128xf32, #tpu.memory_space<vmem>>, vector<1x128xf32>
      %26 = vector.broadcast %25 : vector<1x128xf32> to vector<8x128xf32>
      %27 = arith.mulf %24, %26 : vector<8x128xf32>
      %28 = arith.addf %23, %27 : vector<8x128xf32>
      %c2 = arith.constant 2 : index
      %c0_22 = arith.constant 0 : index
      %29 = vector.load %arg17[%c2, %c0_22] : memref<16x128xf32, #tpu.memory_space<vmem>>, vector<8x128xf32>
      %c2_23 = arith.constant 2 : index
      %c0_24 = arith.constant 0 : index
      %30 = vector.load %arg5[%c2_23, %c0_24] : memref<7x128xf32, #tpu.memory_space<vmem>>, vector<1x128xf32>
      %31 = vector.broadcast %30 : vector<1x128xf32> to vector<8x128xf32>
      %32 = arith.mulf %29, %31 : vector<8x128xf32>
      %33 = arith.addf %28, %32 : vector<8x128xf32>
      %c3 = arith.constant 3 : index
      %c0_25 = arith.constant 0 : index
      %34 = vector.load %arg17[%c3, %c0_25] : memref<16x128xf32, #tpu.memory_space<vmem>>, vector<8x128xf32>
      %c3_26 = arith.constant 3 : index
      %c0_27 = arith.constant 0 : index
      %35 = vector.load %arg5[%c3_26, %c0_27] : memref<7x128xf32, #tpu.memory_space<vmem>>, vector<1x128xf32>
      %36 = vector.broadcast %35 : vector<1x128xf32> to vector<8x128xf32>
      %37 = arith.mulf %34, %36 : vector<8x128xf32>
      %38 = arith.addf %33, %37 : vector<8x128xf32>
      %c4 = arith.constant 4 : index
      %c0_28 = arith.constant 0 : index
      %39 = vector.load %arg17[%c4, %c0_28] : memref<16x128xf32, #tpu.memory_space<vmem>>, vector<8x128xf32>
      %c4_29 = arith.constant 4 : index
      %c0_30 = arith.constant 0 : index
      %40 = vector.load %arg5[%c4_29, %c0_30] : memref<7x128xf32, #tpu.memory_space<vmem>>, vector<1x128xf32>
      %41 = vector.broadcast %40 : vector<1x128xf32> to vector<8x128xf32>
      %42 = arith.mulf %39, %41 : vector<8x128xf32>
      %43 = arith.addf %38, %42 : vector<8x128xf32>
      %c5 = arith.constant 5 : index
      %c0_31 = arith.constant 0 : index
      %44 = vector.load %arg17[%c5, %c0_31] : memref<16x128xf32, #tpu.memory_space<vmem>>, vector<8x128xf32>
      %c5_32 = arith.constant 5 : index
      %c0_33 = arith.constant 0 : index
      %45 = vector.load %arg5[%c5_32, %c0_33] : memref<7x128xf32, #tpu.memory_space<vmem>>, vector<1x128xf32>
      %46 = vector.broadcast %45 : vector<1x128xf32> to vector<8x128xf32>
      %47 = arith.mulf %44, %46 : vector<8x128xf32>
      %48 = arith.addf %43, %47 : vector<8x128xf32>
      %c6 = arith.constant 6 : index
      %c0_34 = arith.constant 0 : index
      %49 = vector.load %arg17[%c6, %c0_34] : memref<16x128xf32, #tpu.memory_space<vmem>>, vector<8x128xf32>
      %c6_35 = arith.constant 6 : index
      %c0_36 = arith.constant 0 : index
      %50 = vector.load %arg5[%c6_35, %c0_36] : memref<7x128xf32, #tpu.memory_space<vmem>>, vector<1x128xf32>
      %51 = vector.broadcast %50 : vector<1x128xf32> to vector<8x128xf32>
      %52 = arith.mulf %49, %51 : vector<8x128xf32>
      %53 = arith.addf %48, %52 : vector<8x128xf32>
      %cst = arith.constant dense<0.000000e+00> : vector<8xf32>
      %54 = vector.multi_reduction <add>, %53, %cst [1] : vector<8x128xf32> to vector<8xf32>
      %55 = vector.shape_cast %54 : vector<8xf32> to vector<8x1xf32>
      %cst_37 = arith.constant 1.250000e-01 : f32
      %56 = vector.broadcast %cst_37 : f32 to vector<8x1xf32>
      %57 = arith.mulf %55, %56 : vector<8x1xf32>
      %58 = arith.mulf %53, %53 : vector<8x128xf32>
      %cst_38 = arith.constant dense<0.000000e+00> : vector<8xf32>
      %59 = vector.multi_reduction <add>, %58, %cst_38 [1] : vector<8x128xf32> to vector<8xf32>
      %60 = vector.shape_cast %59 : vector<8xf32> to vector<8x1xf32>
      %cst_39 = arith.constant 1.250000e-01 : f32
      %61 = vector.broadcast %cst_39 : f32 to vector<8x1xf32>
      %62 = arith.mulf %60, %61 : vector<8x1xf32>
      %63 = arith.mulf %57, %57 : vector<8x1xf32>
      %64 = arith.subf %62, %63 : vector<8x1xf32>
      %65 = vector.broadcast %57 : vector<8x1xf32> to vector<8x128xf32>
      %66 = arith.subf %53, %65 : vector<8x128xf32>
      %cst_40 = arith.constant 9.99999974E-6 : f32
      %67 = vector.broadcast %cst_40 : f32 to vector<8x1xf32>
      %68 = arith.addf %64, %67 : vector<8x1xf32>
      %69 = math.rsqrt %68 : vector<8x1xf32>
      %70 = vector.broadcast %69 : vector<8x1xf32> to vector<8x128xf32>
      %71 = arith.mulf %66, %70 : vector<8x128xf32>
      %c0_41 = arith.constant 0 : index
      %c0_42 = arith.constant 0 : index
      %72 = vector.load %arg7[%c0_41, %c0_42] : memref<1x128xf32, #tpu.memory_space<vmem>>, vector<1x128xf32>
      %73 = vector.broadcast %72 : vector<1x128xf32> to vector<8x128xf32>
      %74 = arith.mulf %71, %73 : vector<8x128xf32>
      %c0_43 = arith.constant 0 : index
      %c0_44 = arith.constant 0 : index
      %75 = vector.load %arg8[%c0_43, %c0_44] : memref<1x128xf32, #tpu.memory_space<vmem>>, vector<1x128xf32>
      %76 = vector.broadcast %75 : vector<1x128xf32> to vector<8x128xf32>
      %77 = arith.addf %74, %76 : vector<8x128xf32>
      %78 = arith.truncf %77 : vector<8x128xf32> to vector<8x128xbf16>
      %c0_45 = arith.constant 0 : index
      %c0_46 = arith.constant 0 : index
      %79 = vector.load %arg9[%c0_45, %c0_46] : memref<128x128xbf16, #tpu.memory_space<vmem>>, vector<128x128xbf16>
      %cst_47 = arith.constant dense<0.000000e+00> : vector<8x128xf32>
      %80 = tpu.matmul %78, %79, %cst_47 {dimension_numbers = #tpu.dot_dimension_numbers<[1], [0], [0], [1], [0, 0, 1, 1], [], []>} : vector<8x128xbf16>, vector<128x128xbf16>, vector<8x128xf32> -> vector<8x128xf32>
      %c0_48 = arith.constant 0 : index
      %c0_49 = arith.constant 0 : index
      %81 = vector.load %arg10[%c0_48, %c0_49] : memref<1x128xf32, #tpu.memory_space<vmem>>, vector<1x128xf32>
      %82 = vector.broadcast %81 : vector<1x128xf32> to vector<8x128xf32>
      %83 = arith.addf %80, %82 : vector<8x128xf32>
      %cst_50 = arith.constant 5.000000e-01 : f32
      %84 = vector.broadcast %cst_50 : f32 to vector<8x128xf32>
      %85 = arith.mulf %84, %83 : vector<8x128xf32>
      %cst_51 = arith.constant 0.707106769 : f32
      %86 = vector.broadcast %cst_51 : f32 to vector<8x128xf32>
      %87 = arith.mulf %83, %86 : vector<8x128xf32>
      %88 = math.erf %87 : vector<8x128xf32>
      %cst_52 = arith.constant 1.000000e+00 : f32
      %89 = vector.broadcast %cst_52 : f32 to vector<8x128xf32>
      %90 = arith.addf %89, %88 : vector<8x128xf32>
      %91 = arith.mulf %85, %90 : vector<8x128xf32>
      %92 = arith.mulf %91, %91 : vector<8x128xf32>
      %c0_53 = arith.constant 0 : index
      %c0_54 = arith.constant 0 : index
      %93 = vector.load %arg16[%c0_53, %c0_54] : memref<1x128xf32, #tpu.memory_space<vmem>>, vector<1x128xf32>
      %cst_55 = arith.constant dense<0.000000e+00> : vector<128xf32>
      %94 = vector.multi_reduction <add>, %92, %cst_55 [0] : vector<8x128xf32> to vector<128xf32>
      %95 = vector.shape_cast %94 : vector<128xf32> to vector<1x128xf32>
      %96 = arith.addf %93, %95 : vector<1x128xf32>
      %c0_56 = arith.constant 0 : index
      %c0_57 = arith.constant 0 : index
      %97 = vector.load %arg16[%c0_56, %c0_57] : memref<1x128xf32, #tpu.memory_space<vmem>>, vector<1x128xf32>
      tpu.vector_store %arg16[%c0_56, %c0_57], %96 {strides = array<i32>} : memref<1x128xf32, #tpu.memory_space<vmem>>, vector<1x128xf32>,
      %98 = arith.truncf %91 : vector<8x128xf32> to vector<8x128xbf16>
      %99 = arith.index_cast %arg2 : i32 to index
      %c0_58 = arith.constant 0 : index
      %c0_59 = arith.constant 0 : index
      %100 = vector.load %arg18[%99, %c0_58, %c0_59] : memref<2x8x128xbf16, #tpu.memory_space<vmem>>, vector<1x8x128xbf16>
      %101 = vector.shape_cast %100 : vector<1x8x128xbf16> to vector<8x128xbf16>
      %102 = vector.shape_cast %98 : vector<8x128xbf16> to vector<1x8x128xbf16>
      tpu.vector_store %arg18[%99, %c0_58, %c0_59], %102 {strides = array<i32>} : memref<2x8x128xbf16, #tpu.memory_space<vmem>>, vector<1x8x128xbf16>,
    } else {
    }
    %c1_i32 = arith.constant 1 : i32
    %14 = arith.cmpi eq, %arg1, %c1_i32 : i32
    %15 = arith.extui %14 : i1 to i32
    %c0_i32_12 = arith.constant 0 : i32
    %16 = arith.cmpi ne, %15, %c0_i32_12 : i32
    scf.if %16 {
      %17 = arith.index_cast %arg2 : i32 to index
      %c0_13 = arith.constant 0 : index
      %c0_14 = arith.constant 0 : index
      %18 = vector.load %arg18[%17, %c0_13, %c0_14] : memref<2x8x128xbf16, #tpu.memory_space<vmem>>, vector<1x8x128xbf16>
      %19 = vector.shape_cast %18 : vector<1x8x128xbf16> to vector<8x128xbf16>
      %20 = arith.extf %19 : vector<8x128xbf16> to vector<8x128xf32>
      %c0_15 = arith.constant 0 : index
      %c0_16 = arith.constant 0 : index
      %21 = vector.load %arg16[%c0_15, %c0_16] : memref<1x128xf32, #tpu.memory_space<vmem>>, vector<1x128xf32>
      %22 = math.sqrt %21 : vector<1x128xf32>
      %cst = arith.constant dense<0.000000e+00> : vector<1xf32>
      %23 = vector.multi_reduction <add>, %22, %cst [1] : vector<1x128xf32> to vector<1xf32>
      %24 = vector.shape_cast %23 : vector<1xf32> to vector<1x1xf32>
      %cst_17 = arith.constant 3.125000e-02 : f32
      %25 = vector.broadcast %cst_17 : f32 to vector<1x1xf32>
      %26 = arith.mulf %24, %25 : vector<1x1xf32>
      %cst_18 = arith.constant 9.99999997E-7 : f32
      %27 = vector.broadcast %cst_18 : f32 to vector<1x1xf32>
      %28 = arith.maximumf %26, %27 : vector<1x1xf32>
      %29 = vector.broadcast %28 : vector<1x1xf32> to vector<1x128xf32>
      %30 = arith.divf %22, %29 : vector<1x128xf32>
      %c0_19 = arith.constant 0 : index
      %c0_20 = arith.constant 0 : index
      %31 = vector.load %arg11[%c0_19, %c0_20] : memref<1x128xf32, #tpu.memory_space<vmem>>, vector<1x128xf32>
      %32 = arith.mulf %31, %30 : vector<1x128xf32>
      %cst_21 = arith.constant 1.000000e+00 : f32
      %33 = vector.broadcast %cst_21 : f32 to vector<1x128xf32>
      %34 = arith.addf %33, %32 : vector<1x128xf32>
      %35 = vector.broadcast %34 : vector<1x128xf32> to vector<8x128xf32>
      %36 = arith.mulf %20, %35 : vector<8x128xf32>
      %c0_22 = arith.constant 0 : index
      %c0_23 = arith.constant 0 : index
      %37 = vector.load %arg12[%c0_22, %c0_23] : memref<1x128xf32, #tpu.memory_space<vmem>>, vector<1x128xf32>
      %38 = vector.broadcast %37 : vector<1x128xf32> to vector<8x128xf32>
      %39 = arith.addf %36, %38 : vector<8x128xf32>
      %40 = arith.truncf %39 : vector<8x128xf32> to vector<8x128xbf16>
      %c0_24 = arith.constant 0 : index
      %c0_25 = arith.constant 0 : index
      %41 = vector.load %arg13[%c0_24, %c0_25] : memref<128x128xbf16, #tpu.memory_space<vmem>>, vector<128x128xbf16>
      %cst_26 = arith.constant dense<0.000000e+00> : vector<8x128xf32>
      %42 = tpu.matmul %40, %41, %cst_26 {dimension_numbers = #tpu.dot_dimension_numbers<[1], [0], [0], [1], [0, 0, 1, 1], [], []>} : vector<8x128xbf16>, vector<128x128xbf16>, vector<8x128xf32> -> vector<8x128xf32>
      %c0_27 = arith.constant 0 : index
      %c0_28 = arith.constant 0 : index
      %43 = vector.load %arg14[%c0_27, %c0_28] : memref<1x128xf32, #tpu.memory_space<vmem>>, vector<1x128xf32>
      %44 = vector.broadcast %43 : vector<1x128xf32> to vector<8x128xf32>
      %45 = arith.addf %42, %44 : vector<8x128xf32>
      %c3 = arith.constant 3 : index
      %c0_29 = arith.constant 0 : index
      %46 = vector.load %arg17[%c3, %c0_29] : memref<16x128xf32, #tpu.memory_space<vmem>>, vector<8x128xf32>
      %47 = arith.addf %46, %45 : vector<8x128xf32>
      %c0_30 = arith.constant 0 : index
      %c0_31 = arith.constant 0 : index
      %c0_32 = arith.constant 0 : index
      %48 = vector.load %arg15[%c0_30, %c0_31, %c0_32] : memref<1x8x128xf32, #tpu.memory_space<vmem>>, vector<1x8x128xf32>
      %49 = vector.shape_cast %48 : vector<1x8x128xf32> to vector<8x128xf32>
      %50 = vector.shape_cast %47 : vector<8x128xf32> to vector<1x8x128xf32>
      tpu.vector_store %arg15[%c0_30, %c0_31, %c0_32], %50 {strides = array<i32>} : memref<1x8x128xf32, #tpu.memory_space<vmem>>, vector<1x8x128xf32>,
    } else {
    }
    return
  }
  func.func @transform_0(%arg0: i32, %arg1: i32, %arg2: i32) -> (i32, i32, i32) {
    %c0_i32 = arith.constant 0 : i32
    %c0_i32_0 = arith.constant 0 : i32
    return %arg0, %arg2, %c0_i32 : i32, i32, i32
  }
  func.func @transform_1(%arg0: i32, %arg1: i32, %arg2: i32) -> (i32, i32, i32) {
    %c1_i32 = arith.constant 1 : i32
    %0 = arith.addi %arg2, %c1_i32 : i32
    %c1_i32_0 = arith.constant 1 : i32
    %1 = arith.muli %0, %c1_i32_0 : i32
    %c0_i32 = arith.constant 0 : i32
    %c0_i32_1 = arith.constant 0 : i32
    return %arg0, %1, %c0_i32 : i32, i32, i32
  }
  func.func @transform_2(%arg0: i32, %arg1: i32, %arg2: i32) -> (i32, i32) {
    %c0_i32 = arith.constant 0 : i32
    %c0_i32_0 = arith.constant 0 : i32
    %c0_i32_1 = arith.constant 0 : i32
    return %c0_i32, %c0_i32_0 : i32, i32
  }
  func.func @transform_3(%arg0: i32, %arg1: i32, %arg2: i32) -> (i32, i32) {
    %c0_i32 = arith.constant 0 : i32
    %c0_i32_0 = arith.constant 0 : i32
    %c0_i32_1 = arith.constant 0 : i32
    return %c0_i32, %c0_i32_0 : i32, i32
  }
  func.func @transform_4(%arg0: i32, %arg1: i32, %arg2: i32) -> (i32, i32) {
    %c0_i32 = arith.constant 0 : i32
    %c0_i32_0 = arith.constant 0 : i32
    %c0_i32_1 = arith.constant 0 : i32
    return %c0_i32, %c0_i32_0 : i32, i32
  }
  func.func @transform_5(%arg0: i32, %arg1: i32, %arg2: i32) -> (i32, i32) {
    %c0_i32 = arith.constant 0 : i32
    %c0_i32_0 = arith.constant 0 : i32
    %c0_i32_1 = arith.constant 0 : i32
    return %c0_i32, %c0_i32_0 : i32, i32
  }
  func.func @transform_6(%arg0: i32, %arg1: i32, %arg2: i32) -> (i32, i32) {
    %c0_i32 = arith.constant 0 : i32
    %c0_i32_0 = arith.constant 0 : i32
    %c0_i32_1 = arith.constant 0 : i32
    return %c0_i32, %c0_i32_0 : i32, i32
  }
  func.func @transform_7(%arg0: i32, %arg1: i32, %arg2: i32) -> (i32, i32) {
    %c0_i32 = arith.constant 0 : i32
    %c0_i32_0 = arith.constant 0 : i32
    %c0_i32_1 = arith.constant 0 : i32
    return %c0_i32, %c0_i32_0 : i32, i32
  }
  func.func @transform_8(%arg0: i32, %arg1: i32, %arg2: i32) -> (i32, i32) {
    %c0_i32 = arith.constant 0 : i32
    %c0_i32_0 = arith.constant 0 : i32
    %c0_i32_1 = arith.constant 0 : i32
    return %c0_i32, %c0_i32_0 : i32, i32
  }
  func.func @transform_9(%arg0: i32, %arg1: i32, %arg2: i32) -> (i32, i32) {
    %c0_i32 = arith.constant 0 : i32
    %c0_i32_0 = arith.constant 0 : i32
    %c0_i32_1 = arith.constant 0 : i32
    return %c0_i32, %c0_i32_0 : i32, i32
  }
  func.func @transform_10(%arg0: i32, %arg1: i32, %arg2: i32) -> (i32, i32) {
    %c0_i32 = arith.constant 0 : i32
    %c0_i32_0 = arith.constant 0 : i32
    %c0_i32_1 = arith.constant 0 : i32
    return %c0_i32, %c0_i32_0 : i32, i32
  }
  func.func @transform_11(%arg0: i32, %arg1: i32, %arg2: i32) -> (i32, i32) {
    %c0_i32 = arith.constant 0 : i32
    %c0_i32_0 = arith.constant 0 : i32
    %c0_i32_1 = arith.constant 0 : i32
    return %c0_i32, %c0_i32_0 : i32, i32
  }
  func.func @transform_12(%arg0: i32, %arg1: i32, %arg2: i32) -> (i32, i32, i32) {
    %0 = arith.muli %arg2, %arg1 : i32
    %c0_i32 = arith.constant 0 : i32
    %c0_i32_0 = arith.constant 0 : i32
    return %arg0, %0, %c0_i32 : i32, i32, i32
  }
}

</mosaic_0001>

<bundles_post_ra>
// kernel: convnext_block.1
= control target key start
LH: loop header
LB: loop body
LE: loop exit
PB: predicated region body
PF: predicated region fallthrough
CT: control target
= control target key end

     0   :  { %s1322_s21 = smov 0   ;;  %s1324_s22 = smov 0   ;;  %s1502_s0 = inlined_call_operand.vmem [shape: f32[2,24,128], index: 0, kind: input, shape index: {}, may-alias: {0,1}]   ;;  %s1503_s1 = inlined_call_operand.vmem [shape: f32[2,24,128], index: 1, kind: input, shape index: {}, may-alias: {0,1}]   ;;  %s1504_s2 = inlined_call_operand.vmem [shape: f32[7,128], index: 2, kind: input, shape index: {}]   ;;  %s1505_s3 = inlined_call_operand.vmem [shape: f32[1,128], index: 3, kind: input, shape index: {}]   ;;  %s1506_s4 = inlined_call_operand.vmem [shape: f32[1,128], index: 4, kind: input, shape index: {}]   ;;  %s1507_s5 = inlined_call_operand.vmem [shape: f32[1,128], index: 5, kind: input, shape index: {}]   ;;  %s1508_s6 = inlined_call_operand.vmem [shape: bf16[128,128], index: 6, kind: input, shape index: {}]   ;;  %s1509_s7 = inlined_call_operand.vmem [shape: f32[1,128], index: 7, kind: input, shape index: {}]   ;;  %s1510_s8 = inlined_call_operand.vmem [shape: f32[1,128], index: 8, kind: input, shape index: {}]   ;;  %s1511_s9 = inlined_call_operand.vmem [shape: f32[1,128], index: 9, kind: input, shape index: {}]   ;;  %s1512_s10 = inlined_call_operand.vmem [shape: bf16[128,128], index: 10, kind: input, shape index: {}]   ;;  %s1513_s11 = inlined_call_operand.vmem [shape: f32[1,128], index: 11, kind: input, shape index: {}]   ;;  %s1514_s12 = inlined_call_operand.vmem [shape: f32[2,16,128], index: 12, kind: output, shape index: {}]  }
   0x1   :  { %1519 = sst [smem:[#allocation12_spill]] %s1511_s9  ;;  %s1326_s23 = smov 0  }
   0x2   :  { %1520 = sst [smem:[#allocation13_spill]] %s1513_s11  ;;  %s1328_s24 = smov 0  }
   0x3   :  { %s1330_s25 = smov 0   ;;  %s1332_s26 = smov 0  }
   0x4   :  { %s1334_s27 = smov 0  }
   0x5 LB: > { %1521 = sst [smem:[#allocation5_spill]] %s1238_s24  ;;  %s34_s28 = sadd.s32 1, %s1238_s24  ;;  %s1250_s27 = sphi %s1334_s27, %s22_s27   ;;  %s1246_s26 = sphi %s1332_s26, %s1536_s26   ;;  %s1242_s25 = sphi %s1330_s25, %s1535_s25   ;;  %s1238_s24 = sphi %s1328_s24, %s1534_s24   ;;  %s1234_s23 = sphi %s1326_s23, %s1533_s23   ;;  %s1230_s22 = sphi %s1324_s22, %s1532_s22   ;;  %s1226_s21 = sphi %s1322_s21, %s1531_s21  }
   0x6   : > { %1522 = sst [smem:[#allocation6_spill]] %s1242_s25  ;;  %p35_p0 = scmp.ge.s32.totalorder %s34_s28, 2 }
   0x7   : > { %1523 = sst [smem:[#allocation7_spill]] %s1246_s26  ;;  %s37_s29 = sadd.s32 1, %s1242_s25 }
   0x8   : > { %1524 = sst [smem:[#allocation8_spill]] %s1250_s27  ;;  %p1012_p1 = scmp.ge.s32.totalorder %s1250_s27, 1 }
   0x9   : > { %p409_p2 = scmp.lt.s32.totalorder %s1250_s27, 9  ;;  %s1538_s28 = smov (%p35_p0, %s34_s28), 0 }
   0xa   : > { %1525 = sst [smem:[#allocation9_spill]] %s1538_s28  ;;  %s1540_s29 = smov (!%p35_p0, %s37_s29), %s1242_s25 }
   0xb   : > { %p410_p3 = pnand %p1012_p1, %p409_p2  ;;  %p39_p4 = scmp.ge.s32.totalorder %s1540_s29, 2 }
   0xc   : > { %s41_s30 = sadd.s32 1, %s1246_s26  ;;  %p467_p6 = scmp.lt.s32.totalorder (!%p410_p3), %s1234_s23, 1 }
   0xd   : > { %s1542_s29 = smov (%p39_p4, %s1540_s29), 0  ;;  %s1544_s30 = smov (!%p39_p4, %s41_s30), %s1246_s26 }
   0xe   : > { %1526 = sst [smem:[#allocation10_spill]] %s1542_s29  ;;  %p43_p5 = scmp.ge.s32.totalorder %s1544_s30, 2 }
   0xf   : > { %413 = sbr.rel (%p410_p3) target bundleno = 884 (0x374), region = 68  ;;  %p469_p7 = scmp.lt.s32.totalorder (!%p410_p3), %s1226_s21, 2 }
  0x10   : > { %s1546_s30 = smov (%p43_p5, %s1544_s30), 0  ;;  %s485_s13 = smul.u32 (!%p410_p3), %s1226_s21, %s1230_s22 }
  0x11   : > { %1527 = sst [smem:[#allocation11_spill]] %s1546_s30  ;;  %s475_s14 = sadd.s32 (!%p410_p3), 1, %s1226_s21 }
  0x12   : > { %p488_p8 = scmp.lt.s32.totalorder (!%p410_p3), %s485_s13, 1  ;;  %p478_p9 = scmp.lt.s32.totalorder (!%p410_p3), %s475_s14, 2 }
  0x13   : > { %p500_p10 = scmp.eq.s32.totalorder (!%p410_p3), %s1230_s22, 0  ;;  %p501_p11 = scmp.eq.s32.totalorder (!%p410_p3), %s1226_s21, 0 }
  0x15   : > { %p502_p12 = pnand (!%p410_p3), %p501_p11, %p500_p10 }
  0x16   : > { %s1548_s23 = smov (!%p467_p6, %s1234_s23), 1  ;;  %s1550_s13 = smov (!%p488_p8, %s485_s13), 1 }
  0x17   : > { %s470_s15 = scalar_select %p469_p7, %s1226_s21, 2 }
  0x18   : > { %s1110_s16 = smul.u32 3, %s1548_s23  ;;  %s1015_s29 = sshll.u32 %s1548_s23, 1  ;;  %v1252_v2 = vmov (!%p502_p12), 0.0  }
  0x19   : > { %s1552_s14 = smov (!%p478_p9, %s475_s14), 2  ;;  %s491_s28 = sadd.s32 %s1015_s29, %s1550_s13  ;;  %506 = vst [vmem:[#allocation2] sm:$0x1] (!%p502_p12), %v1252_v2 }
  0x1a   : > { %s472_s17 = sadd.s32 %s1110_s16, %s470_s15  ;;  %s1016_s26 = sshll.u32 %s491_s28, 3 }
  0x1b   : > { %s1013_s18 = sshll.u32 %s472_s17, 3  ;;  %s481_s25 = sadd.s32 %s1110_s16, %s1552_s14 }
  0x1c   : > { %s474_s30 = scalar_lea.vmem %s1502_s0, %s1013_s18  ;;  %s1381_s15 = scalar_lea.vmem %s1514_s12, %s1016_s26 }
  0x1d   : > { %v496_v0 = vld [vmem:[%s474_s30] sm:$0xff]  ;;  %s1014_s17 = sshll.u32 %s481_s25, 3  ;;  %505 = sbr.rel (%p502_p12) target bundleno = 36 (0x24), region = 72 }
  0x1e   : > { %497 = vst [vmem:[#allocation3] sm:$0xff] %v496_v0  ;;  %s483_s19 = scalar_lea.vmem %s1503_s1, %s1014_s17 }
  0x1f   : > { %v498_v1 = vld [vmem:[%s483_s19] sm:$0xff] }
  0x20   : > { %499 = vst [vmem:[#allocation3 + $0x8] sm:$0xff] %v498_v1 }
  0x24 PF: > { %p1017_p13 = scmp.ne.s32.totalorder %s1230_s22, 0 }
  0x25   : > { %v510_v3 = vld [vmem:[#allocation3] sm:$0xff] (!%p1017_p13)  ;;  %v1018_v4 = vld [vmem:[%s1504_s2] ss:$0 sm:$0xff] (!%p1017_p13)  ;;  %v1253_v10 = vmov (!%p1017_p13), 0.0   ;;  %v1174_v36 = vld [vmem:[%s1508_s6 + $0x10] sm:$0xff] (!%p1017_p13)   ;;  %vm1254_vm0 = vmmov (!%p1017_p13), 0  }
  0x26   : > { %509 = sbr.rel (%p1017_p13) target bundleno = 473 (0x1d9), region = 76  ;;  %v1019_v5 = vld [vmem:[%s1505_s3] ss:$0 sm:$0xff] (!%p1017_p13)  ;;  %v516_v6 = vmul.f32 (!%p1017_p13), %v1018_v4, %v510_v3  ;;  %v1020_v8 = vld [vmem:[%s1504_s2 + $0x1] ss:$0 sm:$0xff] (!%p1017_p13)  ;;  %1070 = vmatprep.subr.bf16.mxu0 (!%p1017_p13), %v1253_v10  ;;  %v1173_v35 = vld [vmem:[%s1508_s6 + $0x8] sm:$0xff] (!%p1017_p13)   ;;  %1086 = vmatprep.mubr.msk.bf16.mxu0 (!%p1017_p13), %vm1254_vm0, %v1253_v10 }
  0x27   : > { %v525_v7 = vld [vmem:[#allocation3 + $0x1] sm:$0xff] (!%p1017_p13)  ;;  %v1175_v37 = vld [vmem:[%s1508_s6 + $0x18] sm:$0xff] (!%p1017_p13)   ;;  %v1178_v40 = vld [vmem:[%s1508_s6 + $0x30] sm:$0xff] (!%p1017_p13)   ;;  %s1037_s9 = sshll.u32 (!%p1017_p13), %s1226_s21, 2 }
  0x28   : > { %v533_v9 = vld [vmem:[#allocation3 + $0x2] sm:$0xff] (!%p1017_p13)  ;;  %v531_v11 = vmul.f32 (!%p1017_p13), %v1020_v8, %v525_v7  ;;  %v1021_v12 = vld [vmem:[%s1504_s2 + $0x2] ss:$0 sm:$0xff] (!%p1017_p13)  ;;  %v524_v15 = vadd.f32 (!%p1017_p13), %v1019_v5, %v516_v6  ;;  %v1179_v41 = vld [vmem:[%s1508_s6 + $0x38] sm:$0xff] (!%p1017_p13)   ;;  %s731_s11 = scalar_lea.vmem (!%p1017_p13), [#allocation4], %s1037_s9 }
  0x29   : > { %v541_v13 = vld [vmem:[#allocation3 + $0x3] sm:$0xff] (!%p1017_p13)  ;;  %v1022_v14 = vld [vmem:[%s1504_s2 + $0x3] ss:$0 sm:$0xff] (!%p1017_p13)  ;;  %v539_v16 = vmul.f32 (!%p1017_p13), %v1021_v12, %v533_v9  ;;  %v1026_v51 = vld [vmem:[%s1506_s4] ss:$0 sm:$0xff] (!%p1017_p13) }
  0x2a   : > { %v549_v17 = vld [vmem:[#allocation3 + $0x4] sm:$0xff] (!%p1017_p13)  ;;  %v1023_v18 = vld [vmem:[%s1504_s2 + $0x4] ss:$0 sm:$0xff] (!%p1017_p13)  ;;  %v532_v21 = vadd.f32 (!%p1017_p13), %v531_v11, %v524_v15  ;;  %v547_v22 = vmul.f32 (!%p1017_p13), %v1022_v14, %v541_v13  ;;  %v1027_v53 = vld [vmem:[%s1507_s5] ss:$0 sm:$0xff] (!%p1017_p13) }
  0x2b   : > { %v557_v19 = vld [vmem:[#allocation3 + $0x5] sm:$0xff] (!%p1017_p13)  ;;  %v1024_v20 = vld [vmem:[%s1504_s2 + $0x5] ss:$0 sm:$0xff] (!%p1017_p13)  ;;  %v555_v27 = vmul.f32 (!%p1017_p13), %v1023_v18, %v549_v17  ;;  %v1028_v57 = vld [vmem:[%s1509_s7] ss:$0 sm:$0xff] (!%p1017_p13) }
  0x2c   : > { %v1172_v23 = vld [vmem:[%s1508_s6] sm:$0xff] (!%p1017_p13)   ;;  %v540_v26 = vadd.f32 (!%p1017_p13), %v539_v16, %v532_v21  ;;  %v563_v29 = vmul.f32 (!%p1017_p13), %v1024_v20, %v557_v19  ;;  %v1177_v39 = vld [vmem:[%s1508_s6 + $0x28] sm:$0xff] (!%p1017_p13)  }
  0x2d   : > { %v565_v24 = vld [vmem:[#allocation3 + $0x6] sm:$0xff]  ;;  %v1025_v25 = vld [vmem:[%s1504_s2 + $0x6] ss:$0 sm:$0xff]  ;;  %1071 = vmatpush3.bf16.msra.mxu0 %v1172_v23  ;;  %v720_v11 = vld [vmem:[#allocation2] sm:$0x1] }
  0x2e   : > { %1072 = vmatprep.subr.bf16.mxu0 %v1253_v10  ;;  %v548_v28 = vadd.f32 %v547_v22, %v540_v26  ;;  %v571_v31 = vmul.f32 %v1025_v25, %v565_v24  ;;  %v1176_v38 = vld [vmem:[%s1508_s6 + $0x20] sm:$0xff]  }
  0x30   : > { %v556_v30 = vadd.f32 %v555_v27, %v548_v28 }
  0x31   : > { %1073 = vmatpush3.bf16.msra.mxu0 %v1173_v35 }
  0x32   : > { %v564_v32 = vadd.f32 %v563_v29, %v556_v30  ;;  %1074 = vmatprep.subr.bf16.mxu0 %v1253_v10 }
  0x34   : > { %v572_v33 = vadd.f32 %v571_v31, %v564_v32 }
  0x35   : > { %1075 = vmatpush3.bf16.msra.mxu0 %v1174_v36 }
  0x36   : > { %573 = vadd.xlane.f32.xlu0 %v572_v33  ;;  %v576_v34 = vmul.f32 %v572_v33, %v572_v33  ;;  %1076 = vmatprep.subr.bf16.mxu0 %v1253_v10 }
  0x39   : > { %1077 = vmatpush3.bf16.msra.mxu0 %v1175_v37 }
  0x3a   : > { %577 = vadd.xlane.f32.xlu0 %v576_v34  ;;  %1078 = vmatprep.subr.bf16.mxu0 %v1253_v10 }
  0x3d   : > { %1079 = vmatpush3.bf16.msra.mxu0 %v1176_v38 }
  0x3e   : > { %1080 = vmatprep.subr.bf16.mxu0 %v1253_v10 }
  0x41   : > { %1081 = vmatpush3.bf16.msra.mxu0 %v1177_v39 }
  0x42   : > { %1082 = vmatprep.subr.bf16.mxu0 %v1253_v10 }
  0x45   : > { %1083 = vmatpush3.bf16.msra.mxu0 %v1178_v40 }
  0x46   : > { %1084 = vmatprep.subr.bf16.mxu0 %v1253_v10 }
  0x49   : > { %1085 = vmatpush3.bf16.msra.mxu0 %v1179_v41 }
  0xc3   : > { %v574_v42 = vpop.xlane.xlu0 %573 }
  0xc4   : > { %v575_v43 = vmul.f32 0.125, %v574_v42 }
  0xc6   : > { %v580_v45 = vmul.f32 %v575_v43, %v575_v43  ;;  %v582_v49 = vsub.f32 %v572_v33, %v575_v43 }
  0xc7   : > { %v578_v44 = vpop.xlane.xlu0 %577 }
  0xc8   : > { %v579_v46 = vmul.f32 0.125, %v578_v44 }
  0xca   : > { %v581_v47 = vsub.f32 %v579_v46, %v580_v45 }
  0xcc   : > { %v583_v48 = vadd.f32 1e-05, %v581_v47 }
  0xce   : > { %1180 = vrsqrt.f32 %v583_v48 }
  0xd8   : > { %v1181_v50 = vpop.eup %1180 }
  0xd9   : > { %v585_v52 = vmul.f32 %v1181_v50, %v582_v49 }
  0xdb   : > { %v593_v54 = vmul.f32 %v1026_v51, %v585_v52 }
  0xdd   : > { %v601_v55 = vadd.f32 %v1027_v53, %v593_v54 }
  0xdf   : > { %v602_v56 = vpack.c.bf16 %v601_v55, %v601_v55 }
  0xe1   : > { %1087 = vmatmul.mubr.bf16.vlgmr.msra.gmra.mrb[0].mxu0 %v602_v56 }
 0x1b4   : > { %v708_v58 = vpop.f32.mrb[0].mxu0 }
 0x1b5   : > { %v709_v59 = vadd.f32 %v1028_v57, %v708_v58  ;;  %v1088_v60 = vpop.f32.mrb[1].mxu0 }
 0x1b6   : > { %v711_v61 = vpop.f32.mrb[2].mxu0 }
 0x1b7   : > { %v715_v62 = vmul.f32 0.70710677, %v709_v59  ;;  %v1089_v63 = vpop.f32.mrb[3].mxu0  ;;  %v714_v1 = vmul.f32 0.5, %v709_v59 }
 0x1b9   : > { %1182 = verf.f32 %v715_v62 }
 0x1c3   : > { %v1183_v0 = vpop.eup %1182 }
 0x1c4   : > { %v717_v2 = vadd.f32 1.0, %v1183_v0 }
 0x1c6   : > { %v718_v3 = vmul.f32 %v717_v2, %v714_v1 }
 0x1c8   : > { %v719_v4 = vmul.f32 %v718_v3, %v718_v3  ;;  %v729_v5 = vpack.c.bf16 %v718_v3, %v718_v3 }
 0x1ca   : > { %v721_v6 = vrot.slane %v719_v4, 4  ;;  %732 = vst [vmem:[%s731_s11] sm:$0xf] %v729_v5 }
 0x1cc   : > { %v722_v7 = vadd.f32 %v721_v6, %v719_v4 }
 0x1ce   : > { %v723_v8 = vrot.slane %v722_v7, 2 }
 0x1d0   : > { %v724_v9 = vadd.f32 %v723_v8, %v722_v7 }
 0x1d2   : > { %v725_v10 = vrot.slane %v724_v9, 1 }
 0x1d4   : > { %v726_v12 = vadd.f32 %v725_v10, %v724_v9 }
 0x1d6   : > { %v727_v13 = vadd.f32 %v726_v12, %v720_v11 }
 0x1d8   : > { %728 = vst [vmem:[#allocation2] sm:$0x1] %v727_v13 }
 0x1d9 PF: > { %p1038_p0 = scmp.ne.s32.totalorder %s1230_s22, 1 }
 0x1da   : > { %v1255_v15 = vmov (!%p1038_p0), 0.0   ;;  %v1184_v16 = vld [vmem:[%s1512_s10] sm:$0xff] (!%p1038_p0)   ;;  %vm749_vm3 = vcmask (!%p1038_p0), 1040384   ;;  %v1185_v23 = vld [vmem:[%s1512_s10 + $0x8] sm:$0xff] (!%p1038_p0)   ;;  %v1186_v24 = vld [vmem:[%s1512_s10 + $0x10] sm:$0xff] (!%p1038_p0)   ;;  %vm1256_vm4 = vmmov (!%p1038_p0), 0   ;;  %v761_v33 = vlaneseq (!%p1038_p0) }
 0x1db   : > { %736 = sbr.rel (%p1038_p0) target bundleno = 884 (0x374), region = 80  ;;  %1090 = vmatprep.subr.bf16.mxu0 (!%p1038_p0), %v1255_v15  ;;  %v1187_v25 = vld [vmem:[%s1512_s10 + $0x18] sm:$0xff] (!%p1038_p0)   ;;  %v1188_v26 = vld [vmem:[%s1512_s10 + $0x20] sm:$0xff] (!%p1038_p0)   ;;  %v1189_v27 = vld [vmem:[%s1512_s10 + $0x28] sm:$0xff] (!%p1038_p0)   ;;  %1106 = vmatprep.mubr.msk.bf16.mxu0 (!%p1038_p0), %vm1256_vm4, %v1255_v15  ;;  %s1039_s9 = sshll.u32 (!%p1038_p0), %s1226_s21, 2 }
 0x1dc   : > { %1091 = vmatpush3.bf16.msra.mxu0 (!%p1038_p0), %v1184_v16  ;;  %v1190_v28 = vld [vmem:[%s1512_s10 + $0x30] sm:$0xff] (!%p1038_p0)   ;;  %v1191_v29 = vld [vmem:[%s1512_s10 + $0x38] sm:$0xff] (!%p1038_p0)   ;;  %v762_v34 = vshrl.u32 (!%p1038_p0), %v761_v33, 7  ;;  %v757_v36 = vld [vmem:[%s1510_s8] sm:$0x1] (!%p1038_p0)  ;;  %s738_s27 = scalar_lea.vmem (!%p1038_p0), [#allocation4], %s1039_s9 }
 0x1dd   : > { %1092 = vmatprep.subr.bf16.mxu0 (!%p1038_p0), %v1255_v15  ;;  %v739_v38 = vld [vmem:[%s738_s27] sm:$0xf] (!%p1038_p0)  ;;  %s1528_s30 = sld [smem:[#allocation12_spill]] (!%p1038_p0)  ;;  %s1529_s14 = sld [smem:[#allocation13_spill]] (!%p1038_p0)  ;;  %v887_v50 = vld [vmem:[#allocation3 + $0x3] sm:$0xff] (!%p1038_p0) }
 0x1de   : > { %v763_v40 = vsub.s32 (!%p1038_p0), 0, %v762_v34  ;;  %v740_v41 = vunpack.c.l.bf16 (!%p1038_p0), %v739_v38 }
 0x1df   : > { %v741_v14 = vld [vmem:[#allocation2] sm:$0x1] (!%p1038_p0) }
 0x1e0   : > { %1192 = vrsqrt.f32 (!%p1038_p0), %v741_v14  ;;  %vm744_vm1 = vcmp.eq.f32.partialorder (!%p1038_p0), %v741_v14, inf  ;;  %v747_v18 = vand.u32 (!%p1038_p0), 2147483648, %v741_v14  ;;  %vm746_vm2 = vcmp.eq.f32.partialorder (!%p1038_p0), %v741_v14, 0.0  ;;  %1093 = vmatpush3.bf16.msra.mxu0 (!%p1038_p0), %v1185_v23 }
 0x1e1   : > { %1094 = vmatprep.subr.bf16.mxu0 (!%p1038_p0), %v1255_v15 }
 0x1e3   : > { %v1040_v44 = vld [vmem:[%s1528_s30] ss:$0 sm:$0xff] }
 0x1e4   : > { %1095 = vmatpush3.bf16.msra.mxu0 %v1186_v24  ;;  %v1041_v48 = vld [vmem:[%s1529_s14] ss:$0 sm:$0xff] }
 0x1e5   : > { %1096 = vmatprep.subr.bf16.mxu0 %v1255_v15 }
 0x1e8   : > { %1097 = vmatpush3.bf16.msra.mxu0 %v1187_v25 }
 0x1e9   : > { %1098 = vmatprep.subr.bf16.mxu0 %v1255_v15 }
 0x1ea   : > { %v1193_v17 = vpop.eup %1192 }
 0x1eb   : > { %v743_v19 = vmul.f32 %v1193_v17, %v741_v14 }
 0x1ec   : > { %1099 = vmatpush3.bf16.msra.mxu0 %v1188_v26 }
 0x1ed   : > { %v745_v20 = vsel %vm744_vm1, %v741_v14, %v743_v19  ;;  %1100 = vmatprep.subr.bf16.mxu0 %v1255_v15 }
 0x1ee   : > { %v748_v21 = vsel %vm746_vm2, %v747_v18, %v745_v20 }
 0x1ef   : > { %v750_v22 = vsel %vm749_vm3, %v748_v21, 0.0 }
 0x1f0   : > { %751 = vadd.xlane.f32.xlu0 %v750_v22  ;;  %1101 = vmatpush3.bf16.msra.mxu0 %v1189_v27 }
 0x1f1   : > { %1102 = vmatprep.subr.bf16.mxu0 %v1255_v15 }
 0x1f4   : > { %1103 = vmatpush3.bf16.msra.mxu0 %v1190_v28 }
 0x1f5   : > { %1104 = vmatprep.subr.bf16.mxu0 %v1255_v15 }
 0x1f8   : > { %1105 = vmatpush3.bf16.msra.mxu0 %v1191_v29 }
 0x27d   : > { %v752_v30 = vpop.xlane.xlu0 %751 }
 0x27e   : > { %v753_v31 = vmul.f32 0.03125, %v752_v30 }
 0x280   : > { %v754_v32 = vmax.f32 %v753_v31, 1e-06 }
 0x282   : > { %1194 = vrcp.f32 %v754_v32 }
 0x28c   : > { %v1195_v35 = vpop.eup %1194 }
 0x28d   : > { %v756_v37 = vmul.f32 %v1195_v35, %v748_v21 }
 0x28f   : > { %v758_v39 = vmul.f32 %v757_v36, %v756_v37 }
 0x291   : > { %v759_v42 = vadd.f32 1.0, %v758_v39 }
 0x293   : > { %v764_v43 = vrot.slane %v759_v42, %v763_v40 }
 0x295   : > { %v766_v45 = vmul.f32 %v764_v43, %v740_v41 }
 0x297   : > { %v774_v46 = vadd.f32 %v1040_v44, %v766_v45 }
 0x299   : > { %v775_v47 = vpack.c.bf16 %v774_v46, %v774_v46 }
 0x29b   : > { %1107 = vmatmul.mubr.bf16.vlgmr.msra.gmra.mrb[0].mxu0 %v775_v47 }
 0x36e   : > { %v881_v49 = vpop.f32.mrb[0].mxu0 }
 0x36f   : > { %v882_v51 = vadd.f32 %v1041_v48, %v881_v49  ;;  %v1108_v52 = vpop.f32.mrb[1].mxu0 }
 0x370   : > { %v884_v53 = vpop.f32.mrb[2].mxu0 }
 0x371   : > { %v888_v54 = vadd.f32 %v887_v50, %v882_v51  ;;  %v1109_v55 = vpop.f32.mrb[3].mxu0 }
 0x373   : > { %889 = vst [vmem:[%s1381_s15] sm:$0xff] %v888_v54 }
 0x374 PF: > { %s1530_s16 = sld [smem:[#allocation8_spill]]  ;;  %s1531_s21 = sld [smem:[#allocation5_spill]] }
 0x375   : > { %s1532_s22 = sld [smem:[#allocation6_spill]]  ;;  %s1533_s23 = sld [smem:[#allocation7_spill]] }
 0x376   : > { %s1534_s24 = sld [smem:[#allocation9_spill]]  ;;  %s1535_s25 = sld [smem:[#allocation10_spill]] }
 0x377   : > { %s1536_s26 = sld [smem:[#allocation11_spill]] }
 0x37a   : > { %s22_s27 = sadd.s32 1, %s1530_s16  }
 0x37b   : > { %p19_p1 = scmp.ge.s32.totalorder %s22_s27, 10  }
 0x37d   :  { %21 = sbr.rel (!%p19_p1) target bundleno = 5 (0x5), region = 115 }

</bundles_post_ra>
